<compile_context>
chip_gen: v7x
topology: tpu7x:2x2x1
jax: 0.10.0
libtpu: 0.0.40
codegen_flags: <defaults>
</compile_context>

<pallas_src>
import jax
import jax.numpy as jnp
from jax.experimental import pallas as pl
from jax.experimental.pallas import tpu as pltpu


def _round_up(n, m):
    return ((n + m - 1) // m) * m


def attack_kernel(x_ref, w1t_ref, b1_ref, w2c_ref, b2_ref, ot_ref):
    # x_ref  : (TB, L)   input tile in its natural layout (batch on sublanes)
    # w1t_ref: (H, L)    fc_1 weight, pre-transposed (H = 32)
    # b1_ref : (H, 1)    fc_1 bias (column vector -> lane broadcast)
    # w2c_ref: (O, H, 1) fc_2 weight columns as sublane vectors (O = 2)
    # b2_ref : (O,)      fc_2 bias scalars in SMEM
    # ot_ref : (O, TB)   output tile, batch on lanes (lane-dense store)

    # fc_1 on the MXU in the "q @ k^T" form: contract both operands on L.
    # Result is (H, TB) with the batch on lanes — no transpose of the big x
    # tile anywhere (not in XLA, not in the kernel).
    # (Default precision; for strict bit parity with a PyTorch f32 GEMM one
    #  could pass precision=HIGHEST — MXU is idle here, cost is irrelevant.)
    h = jax.lax.dot_general(
        w1t_ref[...], x_ref[...],
        dimension_numbers=(((1,), (1,)), ((), ())),
        preferred_element_type=jnp.float32)            # (H, TB) f32
    h = jnp.maximum(h + b1_ref[...], 0.0)               # bias + ReLU (f32 VPU)

    # fc_2: K=32, N=2 is far too small for an MXU pass -> per-output-row VPU
    # broadcast-multiply + sublane (XLU) reduction.  Each row is written
    # directly (no concatenate, no width-1 lane slices).
    for o in range(ot_ref.shape[0]):                     # O == 2, unrolled
        col = jnp.sum(h * w2c_ref[o], axis=0, keepdims=True)   # (1, TB)
        ot_ref[o:o + 1, :] = jax.nn.sigmoid(col + b2_ref[o]).astype(ot_ref.dtype)


def attack_forward(x, w1, b1, w2, b2, *, tb=2048, operand_dtype=None):
    """Forward pass of `Attack`.

    x : (B, L) float32, w1: (L, 32), b1: (32,), w2: (32, 2), b2: (2,)
    returns (B, 2) float32  ==  sigmoid(relu(x @ w1 + b1) @ w2 + b2)

    operand_dtype: dtype for the MXU operands (x, w1); e.g. jnp.bfloat16 to
    halve HBM traffic on v6e/v7x.  Accumulation / bias / sigmoid stay float32.
    """
    B, L = x.shape
    H = w1.shape[1]            # 32
    O = w2.shape[1]            # 2

    # Batch tile: lane-dense multiple of 128, clamped to the (128-aligned)
    # batch so we never allocate a block far bigger than needed.
    tb = max(128, _round_up(tb, 128))
    tb = min(tb, _round_up(B, 128))
    grid = (pl.cdiv(B, tb),)   # ragged last block handled by Pallas masking

    if operand_dtype is None:
        operand_dtype = x.dtype
    x_op = x.astype(operand_dtype)                      # (B, L) natural layout
    w1t = w1.T.astype(operand_dtype)                    # (H, L)  tiny transpose
    b1c = b1.reshape(H, 1).astype(jnp.float32)          # (H, 1)
    w2c = w2.T.reshape(O, H, 1).astype(jnp.float32)     # (O, H, 1) column vecs
    b2f = b2.astype(jnp.float32)                        # (O,) -> SMEM scalars

    itemsize = jnp.dtype(operand_dtype).itemsize
    # VMEM budget: double-buffered x tile + output tile + resident weights.
    # (For very large label_number, additionally set pipeline_mode=pl.Buffered(1)
    #  on the weight specs to avoid double-buffering them on v7x's 64 MiB VMEM.)
    vmem_need = 2 * (tb * L * itemsize + O * tb * 4) + 4 * (H * L + H + O * H + O) * 4
    vmem_limit = int(min(48 * 1024 * 1024, max(2 * vmem_need, 16 * 1024 * 1024)))

    ot = pl.pallas_call(
        attack_kernel,
        out_shape=jax.ShapeDtypeStruct((O, B), jnp.float32),
        grid_spec=pl.GridSpec(
            grid=grid,
            in_specs=[
                pl.BlockSpec((tb, L), lambda i: (i, 0)),        # x: batch-tiled, natural layout
                pl.BlockSpec((H, L), lambda i: (0, 0)),         # weights: VMEM-resident
                pl.BlockSpec((H, 1), lambda i: (0, 0)),
                pl.BlockSpec((O, H, 1), lambda i: (0, 0, 0)),
                pl.BlockSpec(memory_space=pltpu.MemorySpace.SMEM),  # b2 scalars
            ],
            out_specs=pl.BlockSpec((O, tb), lambda i: (0, i)),  # lane-dense output
        ),
        compiler_params=pltpu.CompilerParams(
            dimension_semantics=("parallel",),                  # megacore-shardable
            vmem_limit_bytes=vmem_limit),
        cost_estimate=pl.CostEstimate(
            flops=2 * B * L * H + 2 * B * H * O,
            transcendentals=B * O,
            bytes_accessed=(B * L * itemsize + O * B * 4
                            + H * L * itemsize + (H + O * H + O) * 4)),
    )(x_op, w1t, b1c, w2c, b2f)

    return ot.T                                          # (B, O): tiny (2,B) transpose


def init_params(key, label_number, hidden=32, out=2):
    """Deterministic init mimicking PyTorch Linear default (uniform +-1/sqrt(fan_in))."""
    k1, k2, k3, k4 = jax.random.split(key, 4)
    bound1 = 1.0 / jnp.sqrt(label_number)
    bound2 = 1.0 / jnp.sqrt(hidden)
    # stored as (in_features, out_features); biases as 1-D like PyTorch
    w1 = jax.random.uniform(k1, (label_number, hidden), jnp.float32, -bound1, bound1)
    b1 = jax.random.uniform(k2, (hidden,), jnp.float32, -bound1, bound1)
    w2 = jax.random.uniform(k3, (hidden, out), jnp.float32, -bound2, bound2)
    b2 = jax.random.uniform(k4, (out,), jnp.float32, -bound2, bound2)
    return w1, b1, w2, b2


if __name__ == "__main__":
    key = jax.random.PRNGKey(0)
    k_x, k_p = jax.random.split(key)

    batch = 600          # not a multiple of the tile -> exercises ragged blocks
    label_number = 24    # "label_number" input dimension of fc_1

    x = jax.random.normal(k_x, (batch, label_number), jnp.float32)
    w1, b1, w2, b2 = init_params(k_p, label_number)

    # plain JAX reference
    ref = jax.nn.sigmoid(jnp.maximum(x @ w1 + b1, 0.0) @ w2 + b2)

    # f32 path, tb=256 -> grid=(3,) with a ragged last block: exercises
    # multi-step pipelining + masked boundary stores.
    out = attack_forward(x, w1, b1, w2, b2, tb=256)
    out = jax.block_until_ready(out)
    assert out.shape == (batch, 2)
    assert jnp.allclose(out, ref, atol=1e-5), "f32 mismatch vs reference"

    # bf16 MXU operands (halved HBM traffic for x / fc_1 weights on v6e/v7x),
    # f32 accumulation and f32 bias/ReLU/sigmoid math; default (large) tile.
    out_bf16 = attack_forward(x, w1, b1, w2, b2, operand_dtype=jnp.bfloat16)
    out_bf16 = jax.block_until_ready(out_bf16)
    assert out_bf16.shape == (batch, 2)
    assert jnp.allclose(out_bf16, ref, atol=2e-2), "bf16 mismatch vs reference"

    print("KERNEL_OK")
</pallas_src>

<mosaic_0001>
module attributes {stable_mosaic.version = 11 : i64} {
  func.func @attack_kernel(%arg0: i32, %arg1: memref<256x24xf32, #tpu.memory_space<vmem>>, %arg2: memref<32x24xf32, #tpu.memory_space<vmem>>, %arg3: memref<32x1xf32, #tpu.memory_space<vmem>>, %arg4: memref<2x32x1xf32, #tpu.memory_space<vmem>>, %arg5: memref<2xf32, #tpu.memory_space<smem>>, %arg6: memref<2x256xf32, #tpu.memory_space<vmem>>) attributes {dimension_semantics = [#tpu.dimension_semantics<parallel>], iteration_bounds = array<i64: 3>, scalar_prefetch = 0 : i64, scratch_operands = 0 : i64, tpu.core_type = #tpu.core_type<tc>, window_params = [{transform_indices = @transform_0, window_bounds = array<i64: 256, 24>}, {pipeline_mode = #tpu.pipeline_mode<synchronous>, transform_indices = @transform_1, window_bounds = array<i64: 32, 24>}, {pipeline_mode = #tpu.pipeline_mode<synchronous>, transform_indices = @transform_2, window_bounds = array<i64: 32, 1>}, {pipeline_mode = #tpu.pipeline_mode<synchronous>, transform_indices = @transform_3, window_bounds = array<i64: 2, 32, 1>}, {transform_indices = @transform_4, window_bounds = array<i64: 2>}, {transform_indices = @transform_5, window_bounds = array<i64: 2, 256>}]} {
    %c0 = arith.constant 0 : index
    %c0_0 = arith.constant 0 : index
    %0 = vector.load %arg2[%c0, %c0_0] : memref<32x24xf32, #tpu.memory_space<vmem>>, vector<32x24xf32>
    %c0_1 = arith.constant 0 : index
    %c0_2 = arith.constant 0 : index
    %1 = vector.load %arg1[%c0_1, %c0_2] : memref<256x24xf32, #tpu.memory_space<vmem>>, vector<256x24xf32>
    %cst = arith.constant dense<0.000000e+00> : vector<32x256xf32>
    %2 = tpu.matmul %0, %1, %cst {dimension_numbers = #tpu.dot_dimension_numbers<[1], [1], [0], [0], [0, 0, 1, 0], [], []>} : vector<32x24xf32>, vector<256x24xf32>, vector<32x256xf32> -> vector<32x256xf32>
    %c0_3 = arith.constant 0 : index
    %c0_4 = arith.constant 0 : index
    %3 = vector.load %arg3[%c0_3, %c0_4] : memref<32x1xf32, #tpu.memory_space<vmem>>, vector<32x1xf32>
    %4 = vector.broadcast %3 : vector<32x1xf32> to vector<32x256xf32>
    %5 = arith.addf %2, %4 : vector<32x256xf32>
    %cst_5 = arith.constant 0.000000e+00 : f32
    %6 = vector.broadcast %cst_5 : f32 to vector<32x256xf32>
    %7 = arith.maximumf %5, %6 : vector<32x256xf32>
    %c0_6 = arith.constant 0 : index
    %c0_7 = arith.constant 0 : index
    %c0_8 = arith.constant 0 : index
    %8 = vector.load %arg4[%c0_6, %c0_7, %c0_8] : memref<2x32x1xf32, #tpu.memory_space<vmem>>, vector<1x32x1xf32>
    %9 = vector.shape_cast %8 : vector<1x32x1xf32> to vector<32x1xf32>
    %10 = vector.broadcast %9 : vector<32x1xf32> to vector<32x256xf32>
    %11 = arith.mulf %7, %10 : vector<32x256xf32>
    %cst_9 = arith.constant dense<0.000000e+00> : vector<256xf32>
    %12 = vector.multi_reduction <add>, %11, %cst_9 [0] : vector<32x256xf32> to vector<256xf32>
    %13 = vector.shape_cast %12 : vector<256xf32> to vector<1x256xf32>
    %c0_10 = arith.constant 0 : index
    %14 = memref.load %arg5[%c0_10] : memref<2xf32, #tpu.memory_space<smem>>
    %15 = vector.broadcast %14 : f32 to vector<1x256xf32>
    %16 = arith.addf %13, %15 : vector<1x256xf32>
    %17 = arith.negf %16 : vector<1x256xf32>
    %18 = math.exp %17 : vector<1x256xf32>
    %cst_11 = arith.constant 1.000000e+00 : f32
    %19 = vector.broadcast %cst_11 : f32 to vector<1x256xf32>
    %20 = arith.addf %19, %18 : vector<1x256xf32>
    %21 = arith.divf %19, %20 : vector<1x256xf32>
    %c0_12 = arith.constant 0 : index
    %c0_13 = arith.constant 0 : index
    %22 = vector.load %arg6[%c0_12, %c0_13] : memref<2x256xf32, #tpu.memory_space<vmem>>, vector<1x256xf32>
    tpu.vector_store %arg6[%c0_12, %c0_13], %21 {strides = array<i32>} : memref<2x256xf32, #tpu.memory_space<vmem>>, vector<1x256xf32>,
    %c1 = arith.constant 1 : index
    %c0_14 = arith.constant 0 : index
    %c0_15 = arith.constant 0 : index
    %23 = vector.load %arg4[%c1, %c0_14, %c0_15] : memref<2x32x1xf32, #tpu.memory_space<vmem>>, vector<1x32x1xf32>
    %24 = vector.shape_cast %23 : vector<1x32x1xf32> to vector<32x1xf32>
    %25 = vector.broadcast %24 : vector<32x1xf32> to vector<32x256xf32>
    %26 = arith.mulf %7, %25 : vector<32x256xf32>
    %cst_16 = arith.constant dense<0.000000e+00> : vector<256xf32>
    %27 = vector.multi_reduction <add>, %26, %cst_16 [0] : vector<32x256xf32> to vector<256xf32>
    %28 = vector.shape_cast %27 : vector<256xf32> to vector<1x256xf32>
    %c1_17 = arith.constant 1 : index
    %29 = memref.load %arg5[%c1_17] : memref<2xf32, #tpu.memory_space<smem>>
    %30 = vector.broadcast %29 : f32 to vector<1x256xf32>
    %31 = arith.addf %28, %30 : vector<1x256xf32>
    %32 = arith.negf %31 : vector<1x256xf32>
    %33 = math.exp %32 : vector<1x256xf32>
    %cst_18 = arith.constant 1.000000e+00 : f32
    %34 = vector.broadcast %cst_18 : f32 to vector<1x256xf32>
    %35 = arith.addf %34, %33 : vector<1x256xf32>
    %36 = arith.divf %34, %35 : vector<1x256xf32>
    %c1_19 = arith.constant 1 : index
    %c0_20 = arith.constant 0 : index
    %37 = vector.load %arg6[%c1_19, %c0_20] : memref<2x256xf32, #tpu.memory_space<vmem>>, vector<1x256xf32>
    tpu.vector_store %arg6[%c1_19, %c0_20], %36 {strides = array<i32>} : memref<2x256xf32, #tpu.memory_space<vmem>>, vector<1x256xf32>,
    return
  }
  func.func @transform_0(%arg0: i32) -> (i32, i32) {
    %c0_i32 = arith.constant 0 : i32
    %c0_i32_0 = arith.constant 0 : i32
    return %arg0, %c0_i32 : i32, i32
  }
  func.func @transform_1(%arg0: i32) -> (i32, i32) {
    %c0_i32 = arith.constant 0 : i32
    %c0_i32_0 = arith.constant 0 : i32
    %c0_i32_1 = arith.constant 0 : i32
    return %c0_i32, %c0_i32_0 : i32, i32
  }
  func.func @transform_2(%arg0: i32) -> (i32, i32) {
    %c0_i32 = arith.constant 0 : i32
    %c0_i32_0 = arith.constant 0 : i32
    %c0_i32_1 = arith.constant 0 : i32
    return %c0_i32, %c0_i32_0 : i32, i32
  }
  func.func @transform_3(%arg0: i32) -> (i32, i32, i32) {
    %c0_i32 = arith.constant 0 : i32
    %c0_i32_0 = arith.constant 0 : i32
    %c0_i32_1 = arith.constant 0 : i32
    %c0_i32_2 = arith.constant 0 : i32
    return %c0_i32, %c0_i32_0, %c0_i32_1 : i32, i32, i32
  }
  func.func @transform_4(%arg0: i32) -> i32 {
    %c0_i32 = arith.constant 0 : i32
    %c0_i32_0 = arith.constant 0 : i32
    return %c0_i32 : i32
  }
  func.func @transform_5(%arg0: i32) -> (i32, i32) {
    %c0_i32 = arith.constant 0 : i32
    %c0_i32_0 = arith.constant 0 : i32
    return %c0_i32, %arg0 : i32, i32
  }
}

</mosaic_0001>

<bundles_post_ra>
// kernel: tpu_custom_call.1
= control target key start
LH: loop header
LB: loop body
LE: loop exit
PB: predicated region body
PF: predicated region fallthrough
CT: control target
= control target key end

     0   :  { %10 = vsyncpa [#allocation4], 0  ;;  %s1450_s0 = inlined_call_operand.vmem [shape: f32[600,24], index: 0, kind: input, shape index: {}]   ;;  %s1451_s1 = inlined_call_operand.vmem [shape: f32[32,24], index: 1, kind: input, shape index: {}]   ;;  %s1452_s2 = inlined_call_operand.vmem [shape: f32[32,1], index: 2, kind: input, shape index: {}]   ;;  %s1453_s3 = inlined_call_operand.vmem [shape: f32[2,32,1], index: 3, kind: input, shape index: {}]   ;;  %s1454_s4 = inlined_call_operand.vmem [shape: f32[2], index: 4, kind: input, shape index: {}]   ;;  %s1455_s5 = inlined_call_operand.hbm [shape: f32[2,600], index: 5, kind: output, shape index: {}]  }
   0x1   :  { %11 = vsyncpa [#allocation3], 0 }
   0x2   :  { %13 = vsyncpa [#allocation3 + $0x1], 0  ;;  %s1153_s18 = smov 0   ;;  %s1155_s19 = smov 0  }
   0x3   :  { %s1157_s20 = smov 0   ;;  %s1159_s21 = smov 0  }
   0x4 LB: > { %s1174_s22 = sadd.s32 4294967295, %s1117_s21   ;;  %s798_s23 = sadd.s32 4294967294, %s1117_s21   ;;  %s1117_s21 = sphi %s1159_s21, %s1464_s21   ;;  %s1113_s20 = sphi %s1157_s20, %s1463_s20   ;;  %s1109_s19 = sphi %s1155_s19, %s1462_s19   ;;  %s1105_s18 = sphi %s1153_s18, %s1461_s18  }
   0x5   : > { %s1178_s24 = sadd.s32 1, %s1117_s21   ;;  %s136_s25 = sadd.s32 1, %s1113_s20 }
   0x6   : > { %s133_s26 = ssub.s32 %s1117_s21, %s1178_s24  ;;  %p146_p0 = scmp.ne.s32.totalorder %s1113_s20, %s1109_s19 }
   0x7   : > { %p134_p1 = scmp.eq.s32.totalorder %s133_s26, 0  ;;  %p147_p2 = scmp.eq.s32.totalorder %s1174_s22, 2 }
   0x8   : > { %p152_p3 = scmp.ne.s32.totalorder %s1109_s19, %s1105_s18  ;;  %p153_p4 = scmp.eq.s32.totalorder %s798_s23, 2 }
   0x9   : > { %s1189_s27 = scalar_select %p134_p1, %s1113_s20, %s136_s25  }
   0xa   : > { %p1191_p5 = por %p147_p2, %p146_p0  ;;  %p1195_p6 = por %p153_p4, %p152_p3 }
   0xb   : > { %p799_p7 = scmp.ge.s32.totalorder %s1117_s21, 1  ;;  %p160_p8 = scmp.lt.s32.totalorder %s1117_s21, 4 }
   0xc   : > { %p980_p9 = scmp.eq.s32.totalorder %s1174_s22, 0  ;;  %s182_s8 = sshll.u32 %s1454_s4, 4  ;;  %s183_s8 = int_to_ptr.vmem [resolvable:$true] %s182_s8 }
   0xd   : > { %p1202_p10 = pnand %p799_p7, %p160_p8  ;;  %s1036_s9 = scalar_lea.vmem %s183_s8, 16 }
   0xe   : > { %p1037_p13 = scmp.ne.s32.totalorder %s183_s8, %s1036_s9  ;;  %p1044_p3 = scmp.lt.s32.totalorder %s183_s8, %s183_s8 }
   0xf   : > { %p972_p11 = pneg %p1202_p10  ;;  %p1045_p4 = scmp.lt.s32.totalorder %s1036_s9, %s1036_s9 }
  0x11   : > { %p973_p12 = pnand %p980_p9, %p972_p11  ;;  %p1046_p7 = por %p1045_p4, %p1044_p3 }
  0x13   : > { %p1038_p0 = pneg %p973_p12 }
  0x15   : > { %p1039_p1 = pnand %p1038_p0, %p1037_p13 }
  0x17   : > { %p1040_p2 = pneg %p1039_p1 }
  0x19   : > { %p1047_p8 = pnand %p1046_p7, %p1040_p2 }
  0x1b   : > { %1050 = shalt.err (!%p1047_p8)
}
  0x1c   : > { %s1119_s10 = smov [#allocation2]   ;;  %212 = sbr.rel (%p1202_p10) target bundleno = 416 (0x1a0), region = 40 }
  0x1d   : > { %975 = dma.vmem_to_smem (!%p973_p12), %s183_s8, 16, %s1119_s10, [#allocation4]  }
  0x23   : > { %1096 = dma.done.wait (%p980_p9), [#allocation4], 16  }
  0x24   : > { %1098 = vsyncadd (%p980_p9), [#allocation4], 4294967280 }
  0x25   : > { %218 = sfence }
  0x26   : > { %s805_s11 = sshll.u32 %s1174_s22, 5  ;;  %vm324_vm0 = vcmask 195584   ;;  %v1223_v0 = vld [vmem:[%s1451_s1] sm:$0xff]  ;;  %v1228_v1 = vld [vmem:[%s1451_s1 + $0x10] sm:$0xff]  ;;  %v1120_v3 = vmov 0   ;;  %v303_v5 = vld [vmem:[%s1452_s2 + $0x18] sm:$0xff] }
  0x27   : > { %p250_p10 = scmp.lt.s32.totalorder %s805_s11, 74  ;;  %895 = vmatprep.mubr.msk.f32.mxu0 %vm324_vm0, %v1223_v0  ;;  %899 = vmatprep.mubr.msk.f32.mxu1 %vm324_vm0, %v1228_v1  ;;  %v302_v2 = vld [vmem:[%s1452_s2 + $0x10] sm:$0xff]  ;;  %v300_v4 = vld [vmem:[%s1452_s2] sm:$0xff]  ;;  %v301_v6 = vld [vmem:[%s1452_s2 + $0x8] sm:$0xff]  ;;  %s580_s17 = sld [smem:[#allocation2]] }
  0x28   : > { %1019 = vset.pattern.permute.xlu1 %v1120_v3  ;;  %1018 = vset.pattern.permute.xlu0 %v1120_v3  ;;  %vm1253_vm1 = vmpackc.low %vm324_vm0, %vm324_vm0  ;;  %v531_v17 = vld [vmem:[%s1453_s3 + $0x8] sm:$0xff]  ;;  %v530_v18 = vld [vmem:[%s1453_s3] sm:$0xff]  ;;  %s849_s23 = sld [smem:[#allocation2 + $0x1]]  ;;  %s854_s6 = sshll.u32 (%p1191_p5), %s1174_s22, 1 }
  0x29   : > { %s1466_s11 = smov (!%p250_p10, %s805_s11), 74  ;;  %316 = vperm.xlu1 %1019, %v302_v2   ;;  %306 = vperm.xlu0 %1018, %v300_v4   ;;  %v846_v23 = vld [vmem:[%s1453_s3 + $0x28] sm:$0xff]  ;;  %v845_v24 = vld [vmem:[%s1453_s3 + $0x20] sm:$0xff]  ;;  %v847_v27 = vld [vmem:[%s1453_s3 + $0x30] sm:$0xff]  ;;  %s715_s7 = ssub.s32 (%p1191_p5), 5, %s854_s6 }
  0x2a   : > { %s806_s8 = sshll.u32 %s1466_s11, 3  ;;  %v532_v28 = vld [vmem:[%s1453_s3 + $0x10] sm:$0xff]  ;;  %v848_v33 = vld [vmem:[%s1453_s3 + $0x38] sm:$0xff]  ;;  %v265_v2 = vld [vmem:[%s1451_s1 + $0x8] sm:$0xff]  ;;  %p716_p9 = scmp.lt.s32.totalorder (%p1191_p5), %s715_s7, 2 }
  0x2b   : > { %s1249_s12 = scalar_lea.vmem %s1450_s0, %s806_s8  ;;  %v533_v34 = vld [vmem:[%s1453_s3 + $0x18] sm:$0xff] }
  0x2c   : > { %v284_v8 = vld [vmem:[%s1249_s12 + $0x80] sm:$0xff]  ;;  %v285_v9 = vld [vmem:[%s1249_s12 + $0x88] sm:$0xff]  ;;  %v286_v13 = vld [vmem:[%s1249_s12 + $0x90] sm:$0xff] }
  0x2d   : > { %v268_v10 = vld [vmem:[%s1249_s12] sm:$0xff]  ;;  %321 = vperm.xlu1 %1019, %v303_v5   ;;  %311 = vperm.xlu0 %1018, %v301_v6   ;;  %v903_v11 = vpack.c.bf16 %v285_v9, %v284_v8  ;;  %v269_v12 = vld [vmem:[%s1249_s12 + $0x8] sm:$0xff]  ;;  %v287_v14 = vld [vmem:[%s1249_s12 + $0x98] sm:$0xff] }
  0x2e   : > { %v906_v15 = vpack.c.bf16 %v269_v12, %v268_v10  ;;  %v909_v16 = vpack.c.bf16 %v287_v14, %v286_v13  ;;  %v270_v19 = vld [vmem:[%s1249_s12 + $0x10] sm:$0xff]  ;;  %v271_v20 = vld [vmem:[%s1249_s12 + $0x18] sm:$0xff]  ;;  %v288_v21 = vld [vmem:[%s1249_s12 + $0xa0] sm:$0xff] }
  0x2f   : > { %905 = vmatprep.subr.msk.bf16.mxu0 %vm1253_vm1, %v903_v11  ;;  %951 = vmatprep.subr.msk.bf16.mxu1 %vm1253_vm1, %v903_v11  ;;  %v289_v22 = vld [vmem:[%s1249_s12 + $0xa8] sm:$0xff]  ;;  %v912_v25 = vpack.c.bf16 %v271_v20, %v270_v19  ;;  %v272_v29 = vld [vmem:[%s1249_s12 + $0x20] sm:$0xff]  ;;  %v290_v31 = vld [vmem:[%s1249_s12 + $0xb0] sm:$0xff] }
  0x30   : > { %908 = vmatpush3.bf16.xpose.msk.msra.mxu0 %vm1253_vm1, %v906_v15  ;;  %959 = vmatpush3.bf16.xpose.msk.msra.mxu1 %vm1253_vm1, %v906_v15  ;;  %v915_v26 = vpack.c.bf16 %v289_v22, %v288_v21  ;;  %v273_v30 = vld [vmem:[%s1249_s12 + $0x28] sm:$0xff]  ;;  %v291_v32 = vld [vmem:[%s1249_s12 + $0xb8] sm:$0xff]  ;;  %v274_v37 = vld [vmem:[%s1249_s12 + $0x30] sm:$0xff] }
  0x31   : > { %911 = vmatprep.subr.msk.bf16.mxu0 %vm1253_vm1, %v909_v16  ;;  %952 = vmatprep.subr.msk.bf16.mxu1 %vm1253_vm1, %v909_v16  ;;  %v918_v35 = vpack.c.bf16 %v273_v30, %v272_v29  ;;  %v921_v36 = vpack.c.bf16 %v291_v32, %v290_v31  ;;  %v275_v38 = vld [vmem:[%s1249_s12 + $0x38] sm:$0xff]  ;;  %v292_v39 = vld [vmem:[%s1249_s12 + $0xc0] sm:$0xff]  ;;  %v293_v40 = vld [vmem:[%s1249_s12 + $0xc8] sm:$0xff] }
  0x32   : > { %541 = vperm.xlu1 %1019, %v531_v17   ;;  %536 = vperm.xlu0 %1018, %v530_v18   ;;  %v924_v41 = vpack.c.bf16 %v275_v38, %v274_v37  ;;  %v927_v42 = vpack.c.bf16 %v293_v40, %v292_v39  ;;  %v276_v43 = vld [vmem:[%s1249_s12 + $0x40] sm:$0xff]  ;;  %v277_v44 = vld [vmem:[%s1249_s12 + $0x48] sm:$0xff]  ;;  %v294_v45 = vld [vmem:[%s1249_s12 + $0xd0] sm:$0xff] }
  0x33   : > { %v295_v46 = vld [vmem:[%s1249_s12 + $0xd8] sm:$0xff]  ;;  %v930_v47 = vpack.c.bf16 %v277_v44, %v276_v43  ;;  %v278_v49 = vld [vmem:[%s1249_s12 + $0x50] sm:$0xff]  ;;  %v296_v51 = vld [vmem:[%s1249_s12 + $0xe0] sm:$0xff] }
  0x34   : > { %v933_v48 = vpack.c.bf16 %v295_v46, %v294_v45  ;;  %v279_v50 = vld [vmem:[%s1249_s12 + $0x58] sm:$0xff]  ;;  %v297_v52 = vld [vmem:[%s1249_s12 + $0xe8] sm:$0xff]  ;;  %v280_v55 = vld [vmem:[%s1249_s12 + $0x60] sm:$0xff] }
  0x35   : > { %v936_v53 = vpack.c.bf16 %v279_v50, %v278_v49  ;;  %v939_v54 = vpack.c.bf16 %v297_v52, %v296_v51  ;;  %v281_v56 = vld [vmem:[%s1249_s12 + $0x68] sm:$0xff]  ;;  %v298_v57 = vld [vmem:[%s1249_s12 + $0xf0] sm:$0xff]  ;;  %v299_v58 = vld [vmem:[%s1249_s12 + $0xf8] sm:$0xff] }
  0x36   : > { %631 = vperm.xlu1 %1019, %v846_v23   ;;  %626 = vperm.xlu0 %1018, %v845_v24   ;;  %v942_v59 = vpack.c.bf16 %v281_v56, %v280_v55  ;;  %v945_v60 = vpack.c.bf16 %v299_v58, %v298_v57  ;;  %v282_v61 = vld [vmem:[%s1249_s12 + $0x70] sm:$0xff]  ;;  %v283_v62 = vld [vmem:[%s1249_s12 + $0x78] sm:$0xff]  ;;  %s242_s12 = sand.u32 1, %s1109_s19  }
  0x37   : > { %v948_v63 = vpack.c.bf16 %v283_v62, %v282_v61  ;;  %v267_v3 = vld [vmem:[%s1451_s1 + $0x18] sm:$0xff]  ;;  %s804_s25 = sshll.u32 %s242_s12, 2  ;;  %s1396_s30 = scalar_lea.sflag [#allocation3], %s242_s12 }
  0x38   : > { %914 = vmatpush3.bf16.xpose.msk.msra.mxu0 %vm1253_vm1, %v912_v25  ;;  %960 = vmatpush3.bf16.xpose.msk.msra.mxu1 %vm1253_vm1, %v912_v25  ;;  %s244_s26 = scalar_lea.vmem [#allocation5], %s804_s25 }
  0x39   : > { %917 = vmatprep.subr.msk.bf16.mxu0 %vm1253_vm1, %v915_v26  ;;  %953 = vmatprep.subr.msk.bf16.mxu1 %vm1253_vm1, %v915_v26 }
  0x3a   : > { %636 = vperm.xlu1 %1019, %v847_v27   ;;  %546 = vperm.xlu0 %1018, %v532_v28  }
  0x3e   : > { %641 = vperm.xlu1 %1019, %v848_v33   ;;  %551 = vperm.xlu0 %1018, %v533_v34  }
  0x40   : > { %920 = vmatpush3.bf16.xpose.msk.msra.mxu0 %vm1253_vm1, %v918_v35  ;;  %961 = vmatpush3.bf16.xpose.msk.msra.mxu1 %vm1253_vm1, %v918_v35 }
  0x41   : > { %923 = vmatprep.subr.msk.bf16.mxu0 %vm1253_vm1, %v921_v36  ;;  %954 = vmatprep.subr.msk.bf16.mxu1 %vm1253_vm1, %v921_v36 }
  0x48   : > { %926 = vmatpush3.bf16.xpose.msk.msra.mxu0 %vm1253_vm1, %v924_v41  ;;  %962 = vmatpush3.bf16.xpose.msk.msra.mxu1 %vm1253_vm1, %v924_v41 }
  0x49   : > { %929 = vmatprep.subr.msk.bf16.mxu0 %vm1253_vm1, %v927_v42  ;;  %955 = vmatprep.subr.msk.bf16.mxu1 %vm1253_vm1, %v927_v42 }
  0x50   : > { %932 = vmatpush3.bf16.xpose.msk.msra.mxu0 %vm1253_vm1, %v930_v47  ;;  %963 = vmatpush3.bf16.xpose.msk.msra.mxu1 %vm1253_vm1, %v930_v47 }
  0x51   : > { %935 = vmatprep.subr.msk.bf16.mxu0 %vm1253_vm1, %v933_v48  ;;  %956 = vmatprep.subr.msk.bf16.mxu1 %vm1253_vm1, %v933_v48 }
  0x58   : > { %938 = vmatpush3.bf16.xpose.msk.msra.mxu0 %vm1253_vm1, %v936_v53  ;;  %964 = vmatpush3.bf16.xpose.msk.msra.mxu1 %vm1253_vm1, %v936_v53 }
  0x59   : > { %941 = vmatprep.subr.msk.bf16.mxu0 %vm1253_vm1, %v939_v54  ;;  %957 = vmatprep.subr.msk.bf16.mxu1 %vm1253_vm1, %v939_v54 }
  0x60   : > { %944 = vmatpush3.bf16.xpose.msk.msra.mxu0 %vm1253_vm1, %v942_v59  ;;  %965 = vmatpush3.bf16.xpose.msk.msra.mxu1 %vm1253_vm1, %v942_v59 }
  0x61   : > { %947 = vmatprep.subr.msk.bf16.mxu0 %vm1253_vm1, %v945_v60  ;;  %958 = vmatprep.subr.msk.bf16.mxu1 %vm1253_vm1, %v945_v60 }
  0x68   : > { %950 = vmatpush3.bf16.xpose.msk.msra.mxu0 %vm1253_vm1, %v948_v63  ;;  %966 = vmatpush3.bf16.xpose.msk.msra.mxu1 %vm1253_vm1, %v948_v63 }
  0x6f   : > { %896 = vmatmul.mubr.msk.f32.vlgmr.msra.gmra.mrb[0].mxu0 %vm324_vm0, %v1223_v0  ;;  %900 = vmatmul.mubr.msk.f32.vlgmr.msra.gmra.mrb[0].mxu1 %vm324_vm0, %v1228_v1 }
  0x70   : > { %897 = vmatprep.mubr.msk.f32.mxu0 %vm324_vm0, %v265_v2  ;;  %901 = vmatprep.mubr.msk.f32.mxu1 %vm324_vm0, %v267_v3 }
  0x73   : > { %898 = vmatmul.mubr.msk.f32.gmra.mrb[2].mxu0 %vm324_vm0, %v265_v2  ;;  %902 = vmatmul.mubr.msk.f32.gmra.mrb[2].mxu1 %vm324_vm0, %v267_v3 }
  0xa8   : > { %v317_v4 = vpop.permute.xlu1 %316  ;;  %v307_v5 = vpop.permute.xlu0 %306 }
  0xac   : > { %v322_v6 = vpop.permute.xlu1 %321  ;;  %v312_v7 = vpop.permute.xlu0 %311 }
  0xb1   : > { %v542_v8 = vpop.permute.xlu1 %541  ;;  %v537_v9 = vpop.permute.xlu0 %536 }
  0xb5   : > { %v632_v1 = vpop.permute.xlu1 %631  ;;  %v627_v13 = vpop.permute.xlu0 %626 }
  0xb9   : > { %v637_v27 = vpop.permute.xlu1 %636  ;;  %v547_v28 = vpop.permute.xlu0 %546 }
  0xbd   : > { %v642_v48 = vpop.permute.xlu1 %641  ;;  %v552_v49 = vpop.permute.xlu0 %551 }
 0x142   : > { %v499_v10 = vpop.f32.mrb[0].mxu0  ;;  %v511_v0 = vpop.f32.mrb[0].mxu1 }
 0x143   : > { %v501_v11 = vpop.f32.mrb[1].mxu0  ;;  %v513_v12 = vpop.f32.mrb[1].mxu1  ;;  %v500_v14 = vadd.f32 %v499_v10, %v307_v5  ;;  %v512_v18 = vadd.f32 %v511_v0, %v317_v4 }
 0x144   : > { %v502_v15 = vadd.f32 %v501_v11, %v307_v5  ;;  %v514_v22 = vadd.f32 %v513_v12, %v317_v4 }
 0x145   : > { %v522_v21 = vmax.f32 %v500_v14, 0.0  ;;  %v526_v30 = vmax.f32 %v512_v18, 0.0 }
 0x146   : > { %v505_v16 = vpop.f32.mrb[2].mxu0  ;;  %v517_v17 = vpop.f32.mrb[2].mxu1  ;;  %v523_v23 = vmax.f32 %v502_v15, 0.0  ;;  %v527_v35 = vmax.f32 %v514_v22, 0.0 }
 0x147   : > { %v507_v19 = vpop.f32.mrb[3].mxu0  ;;  %v519_v20 = vpop.f32.mrb[3].mxu1  ;;  %v506_v24 = vadd.f32 %v505_v16, %v312_v7  ;;  %v518_v25 = vadd.f32 %v517_v17, %v322_v6  ;;  %v554_v33 = vmul.f32 %v537_v9, %v522_v21  ;;  %v644_v34 = vmul.f32 %v627_v13, %v522_v21 }
 0x148   : > { %v508_v26 = vadd.f32 %v507_v19, %v312_v7  ;;  %v520_v29 = vadd.f32 %v519_v20, %v322_v6  ;;  %v555_v36 = vmul.f32 %v537_v9, %v523_v23  ;;  %v645_v40 = vmul.f32 %v627_v13, %v523_v23 }
 0x149   : > { %v524_v31 = vmax.f32 %v506_v24, 0.0  ;;  %v528_v39 = vmax.f32 %v518_v25, 0.0  ;;  %v558_v44 = vmul.f32 %v547_v28, %v526_v30  ;;  %v648_v45 = vmul.f32 %v637_v27, %v526_v30 }
 0x14a   : > { %v525_v32 = vmax.f32 %v508_v26, 0.0  ;;  %v529_v43 = vmax.f32 %v520_v29, 0.0  ;;  %v559_v50 = vmul.f32 %v547_v28, %v527_v35  ;;  %v649_v51 = vmul.f32 %v637_v27, %v527_v35 }
 0x14b   : > { %v556_v37 = vmul.f32 %v542_v8, %v524_v31  ;;  %v646_v38 = vmul.f32 %v632_v1, %v524_v31  ;;  %v560_v54 = vmul.f32 %v552_v49, %v528_v39  ;;  %v650_v56 = vmul.f32 %v642_v48, %v528_v39 }
 0x14c   : > { %v557_v41 = vmul.f32 %v542_v8, %v525_v32  ;;  %v647_v42 = vmul.f32 %v632_v1, %v525_v32  ;;  %v561_v58 = vmul.f32 %v552_v49, %v529_v43  ;;  %v651_v60 = vmul.f32 %v642_v48, %v529_v43 }
 0x14d   : > { %v562_v46 = vadd.f32 %v556_v37, %v554_v33  ;;  %v652_v47 = vadd.f32 %v646_v38, %v644_v34  ;;  %v581_v20 = vstv %s580_s17  ;;  %v671_v21 = vstv %s849_s23 }
 0x14e   : > { %v571_v52 = vadd.f32 %v557_v41, %v555_v36  ;;  %v661_v53 = vadd.f32 %v647_v42, %v645_v40 }
 0x14f   : > { %v563_v55 = vadd.f32 %v562_v46, %v558_v44  ;;  %v653_v57 = vadd.f32 %v652_v47, %v648_v45  ;;  %v1121_v44 = vmov 1966171168   ;;  %v602_v46 = vlaneseq }
 0x150   : > { %v572_v59 = vadd.f32 %v571_v52, %v559_v50  ;;  %v662_v61 = vadd.f32 %v661_v53, %v649_v51  ;;  %v600_v45 = vunpack.c.l.s4 %v1121_v44 }
 0x151   : > { %v564_v62 = vadd.f32 %v563_v55, %v560_v54  ;;  %v654_v63 = vadd.f32 %v653_v57, %v650_v56  ;;  %v603_v48 = vshrl.u32 %v602_v46, 7  ;;  %vm616_vm2 = vcmp.lt.s32.totalorder %v602_v46, 256 }
 0x152   : > { %v573_v2 = vadd.f32 %v572_v59, %v561_v58  ;;  %v663_v3 = vadd.f32 %v662_v61, %v651_v60  ;;  %v601_v47 = vunpack.c.0.s8 %v600_v45 }
 0x153   : > { %v565_v4 = vrot.slane %v564_v62, 4  ;;  %v655_v5 = vrot.slane %v654_v63, 4 }
 0x154   : > { %v574_v6 = vrot.slane %v573_v2, 4  ;;  %v664_v7 = vrot.slane %v663_v3, 4  ;;  %v604_v51 = vsub.s32 %v601_v47, %v603_v48 }
 0x155   : > { %v566_v8 = vadd.f32 %v565_v4, %v564_v62  ;;  %v656_v9 = vadd.f32 %v655_v5, %v654_v63 }
 0x156   : > { %v575_v10 = vadd.f32 %v574_v6, %v573_v2  ;;  %v665_v0 = vadd.f32 %v664_v7, %v663_v3 }
 0x157   : > { %v567_v11 = vrot.slane %v566_v8, 2  ;;  %v657_v12 = vrot.slane %v656_v9, 2 }
 0x158   : > { %v576_v1 = vrot.slane %v575_v10, 2  ;;  %v666_v13 = vrot.slane %v665_v0, 2 }
 0x159   : > { %v568_v14 = vadd.f32 %v567_v11, %v566_v8  ;;  %v658_v15 = vadd.f32 %v657_v12, %v656_v9 }
 0x15a   : > { %v577_v16 = vadd.f32 %v576_v1, %v575_v10  ;;  %v667_v17 = vadd.f32 %v666_v13, %v665_v0 }
 0x15b   : > { %v569_v18 = vrot.slane %v568_v14, 1  ;;  %v659_v19 = vrot.slane %v658_v15, 1 }
 0x15c   : > { %v578_v22 = vrot.slane %v577_v16, 1  ;;  %v668_v23 = vrot.slane %v667_v17, 1 }
 0x15d   : > { %v570_v24 = vadd.f32 %v569_v18, %v568_v14  ;;  %v660_v25 = vadd.f32 %v659_v19, %v658_v15 }
 0x15e   : > { %v579_v26 = vadd.f32 %v578_v22, %v577_v16  ;;  %v669_v27 = vadd.f32 %v668_v23, %v667_v17 }
 0x15f   : > { %v582_v28 = vadd.f32 %v581_v20, %v570_v24  ;;  %v672_v29 = vadd.f32 %v671_v21, %v660_v25 }
 0x160   : > { %v583_v30 = vadd.f32 %v581_v20, %v579_v26  ;;  %v673_v31 = vadd.f32 %v671_v21, %v669_v27 }
 0x161   : > { %v843_v32 = vmul.f32 -1.442695, %v582_v28  ;;  %v850_v33 = vmul.f32 -1.442695, %v672_v29 }
 0x162   : > { %v844_v34 = vmul.f32 -1.442695, %v583_v30  ;;  %v851_v35 = vmul.f32 -1.442695, %v673_v31 }
 0x163   : > { %1020 = vpow2.f32 %v843_v32 }
 0x164   : > { %1022 = vpow2.f32 %v850_v33 }
 0x165   : > { %1024 = vpow2.f32 %v844_v34 }
 0x166   : > { %1026 = vpow2.f32 %v851_v35 }
 0x16d   : > { %v1021_v36 = vpop.eup %1020 }
 0x16e   : > { %v1023_v37 = vpop.eup %1022  ;;  %v590_v38 = vadd.f32 1.0, %v1021_v36 }
 0x16f   : > { %v1025_v39 = vpop.eup %1024  ;;  %v680_v40 = vadd.f32 1.0, %v1023_v37 }
 0x170   : > { %v1027_v41 = vpop.eup %1026  ;;  %1028 = vrcp.f32 %v590_v38  ;;  %v591_v42 = vadd.f32 1.0, %v1025_v39 }
 0x171   : > { %1030 = vrcp.f32 %v680_v40  ;;  %v681_v43 = vadd.f32 1.0, %v1027_v41 }
 0x172   : > { %1032 = vrcp.f32 %v591_v42 }
 0x173   : > { %1034 = vrcp.f32 %v681_v43 }
 0x17a   : > { %v1029_v49 = vpop.eup %1028 }
 0x17b   : > { %v1031_v50 = vpop.eup %1030 }
 0x17c   : > { %v1033_v52 = vpop.eup %1032 }
 0x17d   : > { %v1035_v53 = vpop.eup %1034  ;;  %v598_v54 = vcombine.low %v1029_v49, %v1033_v52 }
 0x17e   : > { %v688_v55 = vcombine.low %v1031_v50, %v1035_v53  ;;  %713 = sbr.rel (!%p1191_p5) target bundleno = 416 (0x1a0), region = 48 }
 0x17f   : > { %v605_v56 = vrot.slane %v598_v54, %v604_v51 }
 0x180   : > { %v695_v57 = vrot.slane %v688_v55, %v604_v51 }
 0x181   : > { %v612_v58 = vrot.slane %v605_v56, %v604_v51 }
 0x182   : > { %v702_v59 = vrot.slane %v695_v57, %v604_v51 }
 0x183   : > { %618 = vst.msk [vmem:[%s244_s26] ss:$2 sm:$0x3] %vm616_vm2, %v612_v58 }
 0x184   : > { %852 = vst.msk [vmem:[%s244_s26 + $0x1] ss:$2 sm:$0x3] %vm616_vm2, %v702_v59 }
 0x185   : > { %s1468_s7 = smov (!%p716_p9, %s715_s7), 2 }
 0x186   : > { %s1401_s8 = sshll.u32 %s1468_s7, 5 }
 0x187   : > { %s720_s9 = ssub.s32 64, %s1401_s8 }
 0x188   : > { %721 = vsyncadd %s1396_s30, %s720_s9  ;;  %p856_p11 = scmp.ne.s32.totalorder %s1401_s8, 0  ;;  %s862_s10 = sshll.u32 %s1174_s22, 6 }
 0x189   : > { %s1410_s13 = scalar_lea.hbm %s1455_s5, %s862_s10  ;;  %s727_s14 = sshll.u32 %s244_s26, 4  ;;  %s728_s14 = int_to_ptr.vmem [resolvable:$true] %s727_s14 }
 0x18a   : > { %s1051_s15 = scalar_lea.vmem %s728_s14, %s1401_s8  ;;  %s1122_s16 = smov [#allocation5]  }
 0x18b   : > { %p1052_p5 = scmp.ne.s32.totalorder %s728_s14, %s1051_s15  ;;  %s1055_s12 = sshll.u32 %s1122_s16, 4  ;;  %s1056_s12 = int_to_ptr.vmem [resolvable:$false] %s1055_s12 }
 0x18c   : > { %s1057_s17 = scalar_lea.vmem %s1056_s12, 128  ;;  %p1058_p0 = scmp.lt.s32.totalorder %s728_s14, %s1056_s12 }
 0x18d   : > { %p1053_p12 = pnand %p1052_p5, %p856_p11  ;;  %p1059_p1 = scmp.lt.s32.totalorder %s1057_s17, %s1051_s15 }
 0x18f   : > { %p1054_p13 = pneg %p1053_p12  ;;  %p1060_p2 = por %p1059_p1, %p1058_p0 }
 0x191   : > { %p1061_p3 = pnand %p1060_p2, %p1054_p13 }
 0x193   : > { %1064 = shalt.err (!%p1061_p3)
}
 0x194   : > { %s1065_s22 = scalar_lea.hbm %s1410_s13, %s1401_s8  ;;  %s1069_s26 = scalar_lea.hbm %s1455_s5, 160 }
 0x195   : > { %p1066_p4 = scmp.ne.s32.totalorder %s1410_s13, %s1065_s22  ;;  %p1070_p10 = scmp.lt.u32.totalorder %s1410_s13, %s1455_s5 }
 0x196   : > { %p1071_p9 = scmp.lt.u32.totalorder %s1069_s26, %s1065_s22  ;;  %p1073_p12 = scmp.lt.u32.totalorder %s1065_s22, %s1410_s13 }
 0x197   : > { %p1067_p7 = pnand %p1066_p4, %p856_p11 }
 0x198   : > { %p1072_p5 = por %p1071_p9, %p1070_p10 }
 0x199   : > { %p1068_p8 = pneg %p1067_p7 }
 0x19a   : > { %p1074_p13 = por %p1073_p12, %p1072_p5 }
 0x19c   : > { %p1075_p0 = pnand %p1074_p13, %p1068_p8 }
 0x19e   : > { %1078 = shalt.err (!%p1075_p0)
}
 0x19f   : > { %730 = dma.vmem_to_hbm [thread:$0]  (%p856_p11), %s728_s14, %s1401_s8, %s1410_s13, %s1396_s30  }
 0x1a0 PF: > { %p982_p1 = scmp.ge.s32.totalorder %s1117_s21, 2  ;;  %s739_s9 = sand.u32 1, %s1105_s18  }
 0x1a1   : > { %s740_s10 = scalar_lea.sflag [#allocation3], %s739_s9 }
 0x1a2   : > { %p977_p2 = pnand %p982_p1, %p1195_p6 }
 0x1a4   : > { %1100 = dma.done.wait (!%p977_p2), %s740_s10, 64  }
 0x1a5   : > { %1102 = vsyncadd (!%p977_p2), %s740_s10, 4294967232  ;;  %p16_p3 = scmp.ge.s32.totalorder %s1178_s24, 5   ;;  %s1461_s18 = smov %s1109_s19 }
 0x1a6   : > { %s1462_s19 = smov %s1113_s20  ;;  %s1463_s20 = smov %s1189_s27 }
 0x1a7   : > { %s1464_s21 = smov %s1178_s24  ;;  %18 = sbr.rel (!%p16_p3) target bundleno = 4 (0x4), region = 82 }
 0x1ae   :  { %745 = vsyncpa [#allocation3], 1 }
 0x1af   :  { %747 = vsyncpa [#allocation3 + $0x1], 1 }
 0x1b0   :  { %748 = vsyncpa [#allocation4], 1 }
 0x1b1   :  { %750 = vsyncpa [#allocation4 + $0x1], 1 }

</bundles_post_ra>
